<compile_context>
chip_gen: v7x
topology: tpu7x:2x2x1
jax: 0.10.0
libtpu: 0.0.40
codegen_flags: <defaults>
</compile_context>

<pallas_src>
import functools

import jax
import jax.numpy as jnp
from jax.experimental import pallas as pl
from jax.experimental.pallas import tpu as pltpu


_LANE = 512        # last-dim width: multiple of 128 -> lane-dense loads/VPU ops
_ROW_TILE = 256    # rows per grid step: 512 KiB f32 per tile (x2 for double buffer)


def _round_up(x: int, m: int) -> int:
    return (x + m - 1) // m * m


# ----------------------------------------------------------------------------- #
# Pallas kernel: tiled sum of relu(1-x) or (x-1)^2 over a (rows, _LANE) slab.
# ----------------------------------------------------------------------------- #
def _adv_sum_kernel(x_ref, out_ref, acc_ref, *, hinge: bool):
    @pl.when(pl.program_id(0) == 0)
    def _():
        acc_ref[0] = jnp.float32(0.0)

    x = x_ref[...]                                  # (row_tile, _LANE) f32
    if hinge:
        v = jnp.maximum(1.0 - x, 0.0)               # relu(1 - x)
    else:
        d = x - 1.0
        v = d * d                                   # (x - 1)^2
    acc_ref[0] += jnp.sum(v)

    # Write the running total every step; the final writeback holds the full sum.
    out_ref[0, 0] = acc_ref[0]


def _adv_criterion(x, loss_type: str):
    """mean(relu(1-x)) (hinge) or mean((x-1)^2) (mse) over all elements of x."""
    x = jnp.asarray(x, jnp.float32)
    n = int(x.size)
    flat = x.reshape(-1)

    rows = (max(n, 1) + _LANE - 1) // _LANE
    row_tile = _ROW_TILE if rows >= _ROW_TILE else _round_up(rows, 8)
    rows_pad = _round_up(rows, row_tile)
    total_pad = rows_pad * _LANE

    # Pad with 1.0 so padded elements contribute exactly 0 to either criterion.
    flat = jnp.pad(flat, (0, total_pad - n), constant_values=1.0)
    x2d = flat.reshape(rows_pad, _LANE)

    kernel = functools.partial(_adv_sum_kernel, hinge=(loss_type == "hinge"))

    total = pl.pallas_call(
        kernel,
        out_shape=jax.ShapeDtypeStruct((1, 1), jnp.float32),
        grid_spec=pltpu.PrefetchScalarGridSpec(
            num_scalar_prefetch=0,
            grid=(rows_pad // row_tile,),
            in_specs=[pl.BlockSpec((row_tile, _LANE), lambda r: (r, 0))],
            out_specs=pl.BlockSpec(memory_space=pltpu.MemorySpace.SMEM),
            scratch_shapes=[pltpu.SMEM((1,), jnp.float32)],
        ),
        compiler_params=pltpu.CompilerParams(
            dimension_semantics=("arbitrary",)),
    )(x2d)
    return total[0, 0] / jnp.float32(n)


# ----------------------------------------------------------------------------- #
# Module forward: GeneratorAdversarialLoss.forward semantics.
# ----------------------------------------------------------------------------- #
def generator_adversarial_loss(outputs,
                               average_by_discriminators: bool = True,
                               loss_type: str = "hinge"):
    """outputs: Tensor, list of Tensors, or list of lists of Tensors."""
    assert loss_type in ("mse", "hinge"), f"{loss_type} is not supported."
    adv_loss = jnp.zeros((), jnp.float32)
    if isinstance(outputs, (tuple, list)):
        i = -1
        for i, outputs_ in enumerate(outputs):
            if isinstance(outputs_, (tuple, list)):
                # Only the final discriminator output is used for adversarial loss.
                outputs_ = outputs_[-1]
            adv_loss = adv_loss + _adv_criterion(outputs_, loss_type)
        if average_by_discriminators:
            adv_loss = adv_loss / (i + 1)
    else:
        # A stacked tensor: iterate over its leading axis, always average.
        i = -1
        for i, outputs_ in enumerate(outputs):
            adv_loss = adv_loss + _adv_criterion(outputs_, loss_type)
        adv_loss = adv_loss / (i + 1)
    return adv_loss


if __name__ == "__main__":
    key = jax.random.PRNGKey(0)
    ks = jax.random.split(key, 5)
    B = 2
    # Discriminator outputs: two discriminators returning [feature map, score map]
    # (list-of-lists branch) and one returning just a score tensor.
    outputs = [
        [jax.random.normal(ks[0], (B, 4, 64), jnp.float32),
         jax.random.normal(ks[1], (B, 1, 187), jnp.float32)],
        [jax.random.normal(ks[2], (B, 4, 32), jnp.float32),
         jax.random.normal(ks[3], (B, 1, 93), jnp.float32)],
        jax.random.normal(ks[4], (B, 1, 46), jnp.float32),
    ]

    def ref_crit(x, lt):
        x = jnp.asarray(x, jnp.float32)
        return (jnp.mean(jnp.maximum(1.0 - x, 0.0)) if lt == "hinge"
                else jnp.mean((x - 1.0) ** 2))

    def ref_loss(outs, lt):
        vals = []
        for o in outs:
            if isinstance(o, (tuple, list)):
                o = o[-1]
            vals.append(ref_crit(o, lt))
        return sum(vals) / len(vals)

    ok = True
    for lt in ("hinge", "mse"):
        loss = jax.block_until_ready(
            generator_adversarial_loss(outputs, loss_type=lt))
        ref = ref_loss(outputs, lt)
        ok &= bool(jnp.isfinite(loss))
        ok &= bool(jnp.allclose(loss, ref, rtol=1e-5, atol=1e-5))

    assert ok
    print("KERNEL_OK")
</pallas_src>

<mosaic_0001>
module attributes {stable_mosaic.version = 11 : i64} {
  func.func @_adv_sum_kernel(%arg0: i32, %arg1: memref<8x512xf32, #tpu.memory_space<vmem>>, %arg2: memref<1x1xf32, #tpu.memory_space<smem>>, %arg3: memref<1xf32, #tpu.memory_space<smem>>) attributes {dimension_semantics = [#tpu.dimension_semantics<arbitrary>], iteration_bounds = array<i64: 1>, scalar_prefetch = 0 : i64, scratch_operands = 1 : i64, tpu.core_type = #tpu.core_type<tc>, window_params = [{transform_indices = @transform_0, window_bounds = array<i64: 8, 512>}, {transform_indices = @transform_1, window_bounds = array<i64: 1, 1>}]} {
    %c0_i32 = arith.constant 0 : i32
    %0 = arith.cmpi eq, %arg0, %c0_i32 : i32
    %1 = arith.extui %0 : i1 to i32
    %c0_i32_0 = arith.constant 0 : i32
    %2 = arith.cmpi ne, %1, %c0_i32_0 : i32
    scf.if %2 {
      %cst_9 = arith.constant 0.000000e+00 : f32
      %c0_10 = arith.constant 0 : index
      %17 = memref.load %arg3[%c0_10] : memref<1xf32, #tpu.memory_space<smem>>
      memref.store %cst_9, %arg3[%c0_10] : memref<1xf32, #tpu.memory_space<smem>>
    } else {
    }
    %c0 = arith.constant 0 : index
    %c0_1 = arith.constant 0 : index
    %3 = vector.load %arg1[%c0, %c0_1] : memref<8x512xf32, #tpu.memory_space<vmem>>, vector<8x512xf32>
    %cst = arith.constant 1.000000e+00 : f32
    %4 = vector.broadcast %cst : f32 to vector<8x512xf32>
    %5 = arith.subf %4, %3 : vector<8x512xf32>
    %cst_2 = arith.constant 0.000000e+00 : f32
    %6 = vector.broadcast %cst_2 : f32 to vector<8x512xf32>
    %7 = arith.maximumf %5, %6 : vector<8x512xf32>
    %c0_3 = arith.constant 0 : index
    %8 = memref.load %arg3[%c0_3] : memref<1xf32, #tpu.memory_space<smem>>
    %9 = vector.shape_cast %7 : vector<8x512xf32> to vector<1x8x512xf32>
    %cst_4 = arith.constant dense<0.000000e+00> : vector<1xf32>
    %10 = vector.multi_reduction <add>, %9, %cst_4 [1, 2] : vector<1x8x512xf32> to vector<1xf32>
    %11 = vector.shape_cast %10 : vector<1xf32> to vector<1x1x1xf32>
    %12 = vector.extract %11[0, 0, 0] : f32 from vector<1x1x1xf32>
    %13 = arith.addf %8, %12 : f32
    %c0_5 = arith.constant 0 : index
    %14 = memref.load %arg3[%c0_5] : memref<1xf32, #tpu.memory_space<smem>>
    memref.store %13, %arg3[%c0_5] : memref<1xf32, #tpu.memory_space<smem>>
    %c0_6 = arith.constant 0 : index
    %15 = memref.load %arg3[%c0_6] : memref<1xf32, #tpu.memory_space<smem>>
    %c0_7 = arith.constant 0 : index
    %c0_8 = arith.constant 0 : index
    %16 = memref.load %arg2[%c0_7, %c0_8] : memref<1x1xf32, #tpu.memory_space<smem>>
    memref.store %15, %arg2[%c0_7, %c0_8] : memref<1x1xf32, #tpu.memory_space<smem>>
    return
  }
  func.func @transform_0(%arg0: i32) -> (i32, i32) {
    %c0_i32 = arith.constant 0 : i32
    %c0_i32_0 = arith.constant 0 : i32
    return %arg0, %c0_i32 : i32, i32
  }
  func.func @transform_1(%arg0: i32) -> (i32, i32) {
    %c0_i32 = arith.constant 0 : i32
    %c0_i32_0 = arith.constant 0 : i32
    %c0_i32_1 = arith.constant 0 : i32
    return %c0_i32, %c0_i32_0 : i32, i32
  }
}

</mosaic_0001>

<bundles_post_ra>
// kernel: tpu_custom_call.1
= control target key start
LH: loop header
LB: loop body
LE: loop exit
PB: predicated region body
PF: predicated region fallthrough
CT: control target
= control target key end

     0   :  { %6 = vsyncpa [#allocation4], 0  ;;  %s148_s0 = inlined_call_operand.hbm [shape: f32[8,512], index: 0, kind: input, shape index: {}]   ;;  %s149_s1 = inlined_call_operand.hbm [shape: f32[1,1], index: 1, kind: output, shape index: {}]  }
   0x1   :  { %7 = vsyncpa [#allocation5], 0  ;;  %s112_s6 = smov [#allocation3]   ;;  %s76_s10 = scalar_lea.hbm %s148_s0, 512 }
   0x2   :  { %s14_s7 = sshll.u32 %s112_s6, 4  ;;  %p77_p0 = scmp.ne.s32.totalorder %s148_s0, %s76_s10  ;;  %s15_s7 = int_to_ptr.vmem [resolvable:$true] %s14_s7 }
   0x3   :  { %p80_p1 = scmp.lt.u32.totalorder %s76_s10, %s148_s0 }
   0x5   :  { %p82_p2 = pnand %p80_p1, %p77_p0 }
   0x7   :  { %85 = shalt.err (!%p82_p2)
}
   0x8   :  { %s86_s15 = scalar_lea.vmem %s15_s7, 512  ;;  %p91_p4 = scmp.lt.s32.totalorder %s15_s7, %s15_s7 }
   0x9   :  { %p87_p3 = scmp.ne.s32.totalorder %s15_s7, %s86_s15  ;;  %p92_p5 = scmp.lt.s32.totalorder %s86_s15, %s86_s15 }
   0xb   :  { %p93_p6 = por %p92_p5, %p91_p4 }
   0xd   :  { %p94_p7 = pnand %p93_p6, %p87_p3 }
   0xf   :  { %97 = shalt.err (!%p94_p7)
}
  0x10   :  { %17 = dma.hbm_to_vmem [thread:$0]  %s148_s0, 512, %s15_s7, [#allocation4]  }
  0x11   :  { %108 = dma.done.wait [#allocation4], 512  }
  0x12   :  { %109 = vsyncadd [#allocation4], 4294966784  ;;  %v27_v0 = vld [vmem:[#allocation3] sm:$0xff]  ;;  %v28_v1 = vld [vmem:[#allocation3 + $0x8] sm:$0xff]  ;;  %s98_s20 = scalar_lea.hbm %s149_s1, 16 }
  0x13   :  { %v29_v2 = vld [vmem:[#allocation3 + $0x10] sm:$0xff]  ;;  %v30_v3 = vld [vmem:[#allocation3 + $0x18] sm:$0xff]  ;;  %v31_v4 = vsub.f32 1.0, %v27_v0  ;;  %v32_v5 = vsub.f32 1.0, %v28_v1  ;;  %p99_p8 = scmp.ne.s32.totalorder %s149_s1, %s98_s20  ;;  %p102_p9 = scmp.lt.u32.totalorder %s98_s20, %s149_s1 }
  0x14   :  { %v33_v6 = vsub.f32 1.0, %v29_v2  ;;  %v34_v7 = vsub.f32 1.0, %v30_v3 }
  0x15   :  { %v35_v8 = vmax.f32 %v31_v4, 0.0  ;;  %v36_v9 = vmax.f32 %v32_v5, 0.0  ;;  %p104_p10 = pnand %p102_p9, %p99_p8 }
  0x16   :  { %v37_v10 = vmax.f32 %v33_v6, 0.0  ;;  %v38_v11 = vmax.f32 %v34_v7, 0.0 }
  0x17   :  { %v40_v12 = vadd.f32 %v36_v9, %v35_v8 }
  0x19   :  { %v41_v13 = vadd.f32 %v40_v12, %v37_v10 }
  0x1b   :  { %v42_v14 = vadd.f32 %v41_v13, %v38_v11 }
  0x1d   :  { %43 = vadd.xlane.f32.xlu0 %v42_v14 }
  0xaa   :  { %v44_v15 = vpop.xlane.xlu0 %43 }
  0xab   :  { %v45_v16 = vrot.slane %v44_v15, 4 }
  0xad   :  { %v46_v17 = vadd.f32 %v45_v16, %v44_v15 }
  0xaf   :  { %v47_v18 = vrot.slane %v46_v17, 2 }
  0xb1   :  { %v48_v19 = vadd.f32 %v47_v18, %v46_v17 }
  0xb3   :  { %v49_v20 = vrot.slane %v48_v19, 1 }
  0xb5   :  { %v50_v21 = vadd.f32 %v49_v20, %v48_v19 }
  0xb7   :  { %72 = vpush %v50_v21 }
  0xe8   :  { %s73_s0 = spop %72 }
  0xe9   :  { %57 = sst [smem:[#allocation6]] %s73_s0 }
  0xea   :  { %107 = shalt.err (!%p104_p10)
}
  0xeb   :  { %s113_s25 = smov [#allocation6]  }
  0xec   :  { %65 = dma.smem_to_hbm %s113_s25, 16, %s149_s1, [#allocation5]  }
  0xed   :  { %110 = dma.done.wait [#allocation5], 16  }
  0xee   :  { %111 = vsyncadd [#allocation5], 4294967280 }
  0xef   :  { %69 = sfence }
  0xf0   :  { %70 = vsyncpa [#allocation4], 1 }
  0xf1   :  { %71 = vsyncpa [#allocation5], 1 }

</bundles_post_ra>
